<compile_context>
chip_gen: v7x
topology: tpu7x:2x2x1
jax: 0.10.0
libtpu: 0.0.40
codegen_flags: <defaults>
</compile_context>

<pallas_src>
import jax
import jax.numpy as jnp
from jax import lax
from jax.experimental import pallas as pl
from jax.experimental.pallas import tpu as pltpu

LANES = 128  # vreg lane width


def score_kernel(cust_ref, prod_ref, w_ref, s_c_ref, s_p_ref):
    # Per-row dot of each embedding table against its half of the fc weight.
    # VPU multiply + XLU lane-reduce; runs once, tables read exactly once.
    s_c_ref[...] = jnp.sum(cust_ref[...] * w_ref[0:1, :], axis=-1, keepdims=True)  # [Nc,1]
    s_p_ref[...] = jnp.sum(prod_ref[...] * w_ref[1:2, :], axis=-1, keepdims=True)  # [Np,1]


def lookup_kernel(cid_ref, pid_ref,       # [TR, 128] int32 (VMEM)
                  s_c_ref, s_p_ref,       # [Nc, 1], [Np, 1] f32 (VMEM, block-invariant)
                  b_ref,                  # [1] f32 (SMEM)
                  out_ref):               # [TR, 128] f32 (VMEM, lane-dense)
    # Per example: out = s_c[cid] + s_p[pid] + b, vectorized as a one-hot
    # select + sublane reduce per 128-lane row (no scalar loops, no masked
    # stores, no dynamic VMEM addressing).
    nc = s_c_ref.shape[0]
    nprod = s_p_ref.shape[0]
    tr, lanes = out_ref.shape

    s_c = s_c_ref[...]                                          # [Nc, 1]
    s_p = s_p_ref[...]                                          # [Np, 1]
    row_c = lax.broadcasted_iota(jnp.int32, (nc, lanes), 0)     # [Nc, 128]
    row_p = lax.broadcasted_iota(jnp.int32, (nprod, lanes), 0)  # [Np, 128]

    rows = []
    for r in range(tr):                                         # TR <= 8, static unroll
        cid = cid_ref[r:r + 1, :]                                # [1, 128] int32
        pid = pid_ref[r:r + 1, :]
        g_c = jnp.sum(jnp.where(row_c == cid, s_c, 0.0), axis=0, keepdims=True)  # [1,128]
        g_p = jnp.sum(jnp.where(row_p == pid, s_p, 0.0), axis=0, keepdims=True)
        rows.append(g_c + g_p)
    # One full (TR,128) unmasked store (+ scalar bias from SMEM).
    out_ref[...] = jnp.concatenate(rows, axis=0) + b_ref[0]


def recommendation_forward(x, cust_table, prod_table, fc_w, fc_b):
    """x: [B, 2] int (customer_id, product_id); cust_table: [Nc, E];
    prod_table: [Np, E]; fc_w: [1, 2E]; fc_b: [1]  ->  [B, 1] float32."""
    f32 = jnp.float32
    B = x.shape[0]
    Nc, E = cust_table.shape
    Np = prod_table.shape[0]

    # fc weight split into customer / product halves (row 0 / row 1).
    w2 = jnp.stack([fc_w[0, :E], fc_w[0, E:]], axis=0).astype(f32)   # [2, E]

    # ---- Kernel 1: per-row scores (tables read once, whole-array blocks). ----
    s_c, s_p = pl.pallas_call(
        score_kernel,
        out_shape=(jax.ShapeDtypeStruct((Nc, 1), f32),
                   jax.ShapeDtypeStruct((Np, 1), f32)),
    )(cust_table.astype(f32), prod_table.astype(f32), w2)

    # ---- Kernel 2: per-example lookup, lane-dense [R_pad, 128] batch layout. ----
    R = pl.cdiv(B, LANES)              # 128-lane rows needed for the batch
    TR = 8 if R >= 8 else R            # rows per tile: full (8,128) vreg tiles at scale
    R_pad = TR * pl.cdiv(R, TR)
    B_pad = R_pad * LANES

    cids = (jnp.zeros((B_pad,), jnp.int32).at[:B].set(x[:, 0].astype(jnp.int32))
            .reshape(R_pad, LANES))
    pids = (jnp.zeros((B_pad,), jnp.int32).at[:B].set(x[:, 1].astype(jnp.int32))
            .reshape(R_pad, LANES))

    out = pl.pallas_call(
        lookup_kernel,
        out_shape=jax.ShapeDtypeStruct((R_pad, LANES), f32),
        grid=(R_pad // TR,),
        in_specs=[
            pl.BlockSpec((TR, LANES), lambda t: (t, 0)),     # customer ids tile
            pl.BlockSpec((TR, LANES), lambda t: (t, 0)),     # product ids tile
            pl.BlockSpec((Nc, 1), lambda t: (0, 0)),         # customer scores (invariant)
            pl.BlockSpec((Np, 1), lambda t: (0, 0)),         # product scores (invariant)
            pl.BlockSpec(memory_space=pltpu.MemorySpace.SMEM),  # bias scalar
        ],
        out_specs=pl.BlockSpec((TR, LANES), lambda t: (t, 0)),
        compiler_params=pltpu.CompilerParams(
            dimension_semantics=("parallel",),   # batch tiles split across TCs (v7x)
            vmem_limit_bytes=8 * 1024 * 1024,    # footprint is ~100 KiB; leave headroom
        ),
    )(cids, pids, s_c, s_p, fc_b.astype(f32))

    # Lane-dense [R_pad, 128] -> [B, 1] (free layout plumbing in the wrapper).
    return out.reshape(-1)[:B].reshape(B, 1)


if __name__ == "__main__":
    num_customers, num_products, embed_dim = 64, 32, 50
    B = 8

    key = jax.random.PRNGKey(0)
    k1, k2, k3, k4, k5, k6 = jax.random.split(key, 6)

    # Deterministic synthetic parameters (shapes match nn.Embedding / nn.Linear).
    cust_table = jax.random.normal(k1, (num_customers, embed_dim), jnp.float32)
    prod_table = jax.random.normal(k2, (num_products, embed_dim), jnp.float32)
    bound = 1.0 / float(jnp.sqrt(2.0 * embed_dim))
    fc_w = jax.random.uniform(k3, (1, 2 * embed_dim), jnp.float32, -bound, bound)
    fc_b = jax.random.uniform(k4, (1,), jnp.float32, -bound, bound)

    # Input: [B, 2] index pairs.
    cust_ids = jax.random.randint(k5, (B,), 0, num_customers)
    prod_ids = jax.random.randint(k6, (B,), 0, num_products)
    x = jnp.stack([cust_ids, prod_ids], axis=1).astype(jnp.int32)

    out = recommendation_forward(x, cust_table, prod_table, fc_w, fc_b)
    out = jax.block_until_ready(out)

    # Pure-JAX reference of the PyTorch forward pass.
    feats = jnp.concatenate([cust_table[x[:, 0]], prod_table[x[:, 1]]], axis=1)
    ref = feats @ fc_w.T + fc_b
    assert out.shape == (B, 1), out.shape
    assert jnp.allclose(out, ref, atol=1e-5, rtol=1e-5), (out, ref)
    print("KERNEL_OK")
</pallas_src>

<mosaic_0001>
module attributes {stable_mosaic.version = 11 : i64} {
  func.func @score_kernel(%arg0: memref<64x50xf32, #tpu.memory_space<vmem>>, %arg1: memref<32x50xf32, #tpu.memory_space<vmem>>, %arg2: memref<2x50xf32, #tpu.memory_space<vmem>>, %arg3: memref<64x1xf32, #tpu.memory_space<vmem>>, %arg4: memref<32x1xf32, #tpu.memory_space<vmem>>) attributes {dimension_semantics = [], scalar_prefetch = 0 : i64, scratch_operands = 0 : i64, tpu.core_type = #tpu.core_type<tc>} {
    %c0 = arith.constant 0 : index
    %c0_0 = arith.constant 0 : index
    %0 = vector.load %arg0[%c0, %c0_0] : memref<64x50xf32, #tpu.memory_space<vmem>>, vector<64x50xf32>
    %c0_1 = arith.constant 0 : index
    %c0_2 = arith.constant 0 : index
    %1 = vector.load %arg2[%c0_1, %c0_2] : memref<2x50xf32, #tpu.memory_space<vmem>>, vector<1x50xf32>
    %2 = vector.broadcast %1 : vector<1x50xf32> to vector<64x50xf32>
    %3 = arith.mulf %0, %2 : vector<64x50xf32>
    %cst = arith.constant dense<0.000000e+00> : vector<64xf32>
    %4 = vector.multi_reduction <add>, %3, %cst [1] : vector<64x50xf32> to vector<64xf32>
    %5 = vector.shape_cast %4 : vector<64xf32> to vector<64x1xf32>
    %c0_3 = arith.constant 0 : index
    %c0_4 = arith.constant 0 : index
    %6 = vector.load %arg3[%c0_3, %c0_4] : memref<64x1xf32, #tpu.memory_space<vmem>>, vector<64x1xf32>
    tpu.vector_store %arg3[%c0_3, %c0_4], %5 {strides = array<i32>} : memref<64x1xf32, #tpu.memory_space<vmem>>, vector<64x1xf32>,
    %c0_5 = arith.constant 0 : index
    %c0_6 = arith.constant 0 : index
    %7 = vector.load %arg1[%c0_5, %c0_6] : memref<32x50xf32, #tpu.memory_space<vmem>>, vector<32x50xf32>
    %c1 = arith.constant 1 : index
    %c0_7 = arith.constant 0 : index
    %8 = vector.load %arg2[%c1, %c0_7] : memref<2x50xf32, #tpu.memory_space<vmem>>, vector<1x50xf32>
    %9 = vector.broadcast %8 : vector<1x50xf32> to vector<32x50xf32>
    %10 = arith.mulf %7, %9 : vector<32x50xf32>
    %cst_8 = arith.constant dense<0.000000e+00> : vector<32xf32>
    %11 = vector.multi_reduction <add>, %10, %cst_8 [1] : vector<32x50xf32> to vector<32xf32>
    %12 = vector.shape_cast %11 : vector<32xf32> to vector<32x1xf32>
    %c0_9 = arith.constant 0 : index
    %c0_10 = arith.constant 0 : index
    %13 = vector.load %arg4[%c0_9, %c0_10] : memref<32x1xf32, #tpu.memory_space<vmem>>, vector<32x1xf32>
    tpu.vector_store %arg4[%c0_9, %c0_10], %12 {strides = array<i32>} : memref<32x1xf32, #tpu.memory_space<vmem>>, vector<32x1xf32>,
    return
  }
}

</mosaic_0001>

<bundles_post_ra>
// kernel: tpu_custom_call.1
= control target key start
LH: loop header
LB: loop body
LE: loop exit
PB: predicated region body
PF: predicated region fallthrough
CT: control target
= control target key end

     0   :  { %vm37_vm0 = vcmask 408576   ;;  %vm62_vm1 = vcmask 7168   ;;  %s237_s0 = inlined_call_operand.vmem [shape: f32[64,50], index: 0, kind: input, shape index: {}]   ;;  %s238_s2 = inlined_call_operand.vmem [shape: f32[2,50], index: 2, kind: input, shape index: {}]   ;;  %s239_s1 = inlined_call_operand.vmem [shape: f32[32,50], index: 1, kind: input, shape index: {}]   ;;  %s240_s3 = inlined_call_operand.vmem [shape: f32[64,1], index: 3, kind: output, shape index: {0}]   ;;  %s241_s4 = inlined_call_operand.vmem [shape: f32[32,1], index: 4, kind: output, shape index: {1}]  }
   0x1   :  { %v18_v0 = vld [vmem:[%s237_s0 + $0x10] sm:$0xff]  ;;  %v108_v1 = vld [vmem:[%s238_s2] ss:$0 sm:$0xff]  ;;  %v19_v5 = vld [vmem:[%s237_s0 + $0x18] sm:$0xff] }
   0x2   :  { %v16_v2 = vld [vmem:[%s237_s0] sm:$0xff]  ;;  %v31_v3 = vmul.f32 %v108_v1, %v18_v0  ;;  %v17_v6 = vld [vmem:[%s237_s0 + $0x8] sm:$0xff]  ;;  %v32_v7 = vmul.f32 %v108_v1, %v19_v5  ;;  %v23_v17 = vld [vmem:[%s237_s0 + $0x38] sm:$0xff] }
   0x3   :  { %v29_v4 = vmul.f32 %v108_v1, %v16_v2  ;;  %v30_v8 = vmul.f32 %v108_v1, %v17_v6  ;;  %v21_v9 = vld [vmem:[%s237_s0 + $0x28] sm:$0xff]  ;;  %v20_v10 = vld [vmem:[%s237_s0 + $0x20] sm:$0xff]  ;;  %v22_v18 = vld [vmem:[%s237_s0 + $0x30] sm:$0xff]  ;;  %v36_v21 = vmul.f32 %v108_v1, %v23_v17 }
   0x4   :  { %v44_v11 = vsel %vm37_vm0, %v31_v3, 0.0  ;;  %v47_v13 = vsel %vm37_vm0, %v32_v7, 0.0  ;;  %v34_v15 = vmul.f32 %v108_v1, %v21_v9  ;;  %v33_v16 = vmul.f32 %v108_v1, %v20_v10  ;;  %v72_v23 = vld [vmem:[%s239_s1 + $0x8] sm:$0xff]  ;;  %v109_v24 = vld [vmem:[%s238_s2 + $0x1] ss:$0 sm:$0xff]  ;;  %v74_v30 = vld [vmem:[%s239_s1 + $0x18] sm:$0xff] }
   0x5   :  { %v38_v12 = vsel %vm37_vm0, %v29_v4, 0.0  ;;  %45 = vadd.xlane.f32.xlu1 %v44_v11  ;;  %v41_v14 = vsel %vm37_vm0, %v30_v8, 0.0  ;;  %v35_v22 = vmul.f32 %v108_v1, %v22_v18  ;;  %v71_v25 = vld [vmem:[%s239_s1] sm:$0xff]  ;;  %v59_v26 = vsel %vm37_vm0, %v36_v21, 0.0  ;;  %v73_v31 = vld [vmem:[%s239_s1 + $0x10] sm:$0xff] }
   0x6   :  { %39 = vadd.xlane.f32.xlu0 %v38_v12  ;;  %v53_v19 = vsel %vm37_vm0, %v34_v15, 0.0  ;;  %v50_v20 = vsel %vm37_vm0, %v33_v16, 0.0  ;;  %v81_v28 = vmul.f32 %v109_v24, %v72_v23  ;;  %v80_v29 = vmul.f32 %v109_v24, %v71_v25 }
   0x7   :  { %v56_v27 = vsel %vm37_vm0, %v35_v22, 0.0  ;;  %v83_v34 = vmul.f32 %v109_v24, %v74_v30  ;;  %v82_v35 = vmul.f32 %v109_v24, %v73_v31 }
   0x8   :  { %v87_v32 = vsel %vm37_vm0, %v81_v28, 0.0  ;;  %v84_v33 = vsel %vm37_vm0, %v80_v29, 0.0 }
   0x9   :  { %48 = vadd.xlane.f32.xlu1 %v47_v13  ;;  %v93_v36 = vsel %vm37_vm0, %v83_v34, 0.0  ;;  %v90_v37 = vsel %vm37_vm0, %v82_v35, 0.0 }
   0xa   :  { %42 = vadd.xlane.f32.xlu0 %v41_v14 }
   0xd   :  { %54 = vadd.xlane.f32.xlu1 %v53_v19 }
   0xe   :  { %51 = vadd.xlane.f32.xlu0 %v50_v20 }
  0x11   :  { %60 = vadd.xlane.f32.xlu1 %v59_v26 }
  0x12   :  { %57 = vadd.xlane.f32.xlu0 %v56_v27 }
  0x15   :  { %88 = vadd.xlane.f32.xlu1 %v87_v32 }
  0x16   :  { %85 = vadd.xlane.f32.xlu0 %v84_v33 }
  0x19   :  { %94 = vadd.xlane.f32.xlu1 %v93_v36 }
  0x1a   :  { %91 = vadd.xlane.f32.xlu0 %v90_v37 }
  0x92   :  { %v46_v38 = vpop.xlane.xlu1 %45 }
  0x93   :  { %v40_v39 = vpop.xlane.xlu0 %39  ;;  %65 = vst.msk [vmem:[%s240_s3 + $0x10] sm:$0xff] %vm62_vm1, %v46_v38 }
  0x94   :  { %63 = vst.msk [vmem:[%s240_s3] sm:$0xff] %vm62_vm1, %v40_v39 }
  0x96   :  { %v49_v40 = vpop.xlane.xlu1 %48 }
  0x97   :  { %v43_v41 = vpop.xlane.xlu0 %42  ;;  %66 = vst.msk [vmem:[%s240_s3 + $0x18] sm:$0xff] %vm62_vm1, %v49_v40 }
  0x98   :  { %64 = vst.msk [vmem:[%s240_s3 + $0x8] sm:$0xff] %vm62_vm1, %v43_v41 }
  0x9a   :  { %v55_v42 = vpop.xlane.xlu1 %54 }
  0x9b   :  { %v52_v43 = vpop.xlane.xlu0 %51  ;;  %68 = vst.msk [vmem:[%s240_s3 + $0x28] sm:$0xff] %vm62_vm1, %v55_v42 }
  0x9c   :  { %67 = vst.msk [vmem:[%s240_s3 + $0x20] sm:$0xff] %vm62_vm1, %v52_v43 }
  0x9e   :  { %v61_v44 = vpop.xlane.xlu1 %60 }
  0x9f   :  { %v58_v45 = vpop.xlane.xlu0 %57  ;;  %70 = vst.msk [vmem:[%s240_s3 + $0x38] sm:$0xff] %vm62_vm1, %v61_v44 }
  0xa0   :  { %69 = vst.msk [vmem:[%s240_s3 + $0x30] sm:$0xff] %vm62_vm1, %v58_v45 }
  0xa2   :  { %v89_v46 = vpop.xlane.xlu1 %88 }
  0xa3   :  { %v86_v47 = vpop.xlane.xlu0 %85  ;;  %97 = vst.msk [vmem:[%s241_s4 + $0x8] sm:$0xff] %vm62_vm1, %v89_v46 }
  0xa4   :  { %96 = vst.msk [vmem:[%s241_s4] sm:$0xff] %vm62_vm1, %v86_v47 }
  0xa6   :  { %v95_v48 = vpop.xlane.xlu1 %94 }
  0xa7   :  { %v92_v49 = vpop.xlane.xlu0 %91  ;;  %99 = vst.msk [vmem:[%s241_s4 + $0x18] sm:$0xff] %vm62_vm1, %v95_v48 }
  0xa8   :  { %98 = vst.msk [vmem:[%s241_s4 + $0x10] sm:$0xff] %vm62_vm1, %v92_v49 }

</bundles_post_ra>
